<compile_context>
chip_gen: v7x
topology: tpu7x:2x2x1
jax: 0.10.0
libtpu: 0.0.40
codegen_flags: <defaults>
</compile_context>

<pallas_src>
import jax
import jax.numpy as jnp
import numpy as np
from jax.experimental import pallas as pl
from jax.experimental.pallas import tpu as pltpu


# ----------------------------------------------------------------------------
# Host-side glue: size arithmetic identical to the PyTorch module's forward.
# ----------------------------------------------------------------------------
def compute_output_size(h, w, min_size, stride):
    h_f, w_f = float(h), float(w)
    ratio = min(h_f / float(min_size), w_f / float(min_size))
    # Python round() (banker's rounding) — matches the module's `round(h / ratio)`.
    ho, wo = round(h_f / ratio), round(w_f / ratio)
    ho, wo = (ho // stride) * stride, (wo // stride) * stride
    ratio_h, ratio_w = h_f / ho, w_f / wo
    return (ho, wo), (ratio_w, ratio_h)


def bilinear_weight_matrix(in_size, out_size):
    """Weights W (out_size, in_size) s.t. out = W @ in along one axis.

    Matches PyTorch upsample_bilinear2d with align_corners=False:
      src = (dst + 0.5) * (in/out) - 0.5, clamped to >= 0,
      idx0 = floor(src), idx1 = min(idx0 + 1, in - 1), lam = src - idx0.
    Kept in f32 (bf16 weights would need the self-test tolerance relaxed).
    """
    scale = in_size / out_size
    dst = np.arange(out_size, dtype=np.float64)
    src = (dst + 0.5) * scale - 0.5
    src = np.maximum(src, 0.0)
    idx0 = np.floor(src).astype(np.int64)
    idx0 = np.minimum(idx0, in_size - 1)
    idx1 = np.minimum(idx0 + 1, in_size - 1)
    lam = (src - idx0).astype(np.float32)
    w = np.zeros((out_size, in_size), dtype=np.float32)
    rows = np.arange(out_size)
    np.add.at(w, (rows, idx0), 1.0 - lam)
    np.add.at(w, (rows, idx1), lam)
    return jnp.asarray(w)


# ----------------------------------------------------------------------------
# Pallas kernel (single grid step does all channels; optional Wo tiling axis)
# ----------------------------------------------------------------------------
def _make_resize_kernel(C, H, Ho, h_first):
    def kernel(img_ref, wh_ref, ww_ref, out_ref):
        # img_ref: (C*H, W) | wh_ref: (Ho, H) | ww_ref: (W, TW) | out_ref: (C*Ho, TW)
        wh = wh_ref[...]
        if h_first:
            # Per-channel H-resize (small-K matmuls), fold C into M, then one wide
            # (C*Ho, W) @ (W, TW) on the MXU.  Ho is a multiple of stride (>=16), so
            # the sublane concat is layout-aligned (no relayout copy).
            rows = [
                jnp.dot(wh, img_ref[c * H:(c + 1) * H, :],
                        preferred_element_type=jnp.float32)
                for c in range(C)
            ]
            tmp = jnp.concatenate(rows, axis=0)                          # (C*Ho, W)
            out_ref[...] = jnp.dot(
                tmp, ww_ref[...], preferred_element_type=jnp.float32
            ).astype(out_ref.dtype)
        else:
            # W-resize with C folded into M: one (C*H, W) @ (W, TW), then per-channel
            # H-resize.  This order partitions exactly along Wo tiles (no recompute).
            tmp = jnp.dot(img_ref[...], ww_ref[...],
                          preferred_element_type=jnp.float32)            # (C*H, TW)
            for c in range(C):
                # Static slices; may relayout if H % 8 != 0 — correct either way.
                out_ref[c * Ho:(c + 1) * Ho, :] = jnp.dot(
                    wh, tmp[c * H:(c + 1) * H, :],
                    preferred_element_type=jnp.float32,
                ).astype(out_ref.dtype)

    return kernel


# ----------------------------------------------------------------------------
# Wrapper
# ----------------------------------------------------------------------------
def resize_validation_image_features(image, features, *, min_size, stride=16):
    """JAX/Pallas equivalent of ResizeValidationImageFeatures.forward.

    image:    (C, H, W) float32
    features: (N, 2) float32, columns are (x, y)
    returns (resized_image (C, Ho, Wo), scaled_features (N, 2))
    """
    C, H, W = (int(d) for d in image.shape)
    (Ho, Wo), (ratio_w, ratio_h) = compute_output_size(H, W, min_size, stride)

    wh = bilinear_weight_matrix(H, Ho)            # (Ho, H)
    ww = bilinear_weight_matrix(W, Wo).T          # (W, Wo)

    # --- Wo tiling: bound per-step VMEM (v5e 16 MiB / v7x 32 MiB scoped defaults),
    #     keep the lane dimension >=512 where possible for HBM roofline. ---
    tw = Wo if Wo <= 512 else 512                 # 512 is a multiple of 128
    n_tiles = pl.cdiv(Wo, tw)

    # --- Contraction order: cheaper of  Wh@(img)@Ww  per-channel FLOPs.  When Wo is
    #     tiled, force the W-first order (tiles with zero redundant work; H-first
    #     would recompute the H pass per tile). ---
    flops_h_first = Ho * W * (H + Wo)
    flops_w_first = H * Wo * (W + Ho)
    h_first = (n_tiles == 1) and (flops_h_first <= flops_w_first)

    flops = 2 * C * (flops_h_first if h_first else flops_w_first)
    bytes_accessed = 4 * (C * H * W + Ho * H + W * Wo + C * Ho * Wo)

    # VMEM footprint estimate (inputs/outputs double-buffered) -> explicit limit,
    # clamped so it stays safe on v7x's 64 MiB physical VMEM.
    est = 4 * (2 * C * H * W + 2 * Ho * H + 2 * W * tw + 2 * C * Ho * tw
               + C * max(H, Ho) * max(W, tw))
    vmem_limit = int(min(max(2 * est, 32 * 1024 * 1024), 48 * 1024 * 1024))

    kernel = _make_resize_kernel(C, H, Ho, h_first)
    resized_flat = pl.pallas_call(
        kernel,
        out_shape=jax.ShapeDtypeStruct((C * Ho, Wo), image.dtype),
        grid=(n_tiles,),
        in_specs=[
            pl.BlockSpec((C * H, W), lambda j: (0, 0)),   # image, C folded into rows
            pl.BlockSpec((Ho, H), lambda j: (0, 0)),      # Wh (resident across tiles)
            pl.BlockSpec((W, tw), lambda j: (0, j)),      # Ww column tile
        ],
        out_specs=pl.BlockSpec((C * Ho, tw), lambda j: (0, j)),
        compiler_params=pltpu.CompilerParams(
            # Wo tiles are independent -> clean megacore split on v7x; no-op elsewhere.
            dimension_semantics=("parallel",),
            vmem_limit_bytes=vmem_limit,
        ),
        cost_estimate=pl.CostEstimate(
            flops=int(flops), transcendentals=0, bytes_accessed=int(bytes_accessed)),
    )(image.reshape(C * H, W), wh, ww)

    resized = resized_flat.reshape(C, Ho, Wo)

    # Feature rescale: 2*N multiplies — plain JAX (a dedicated pallas_call would be
    # pure launch overhead with a masked 2-lane store).
    ratio = jnp.asarray([ratio_w, ratio_h], dtype=features.dtype)
    scaled_features = features / ratio

    return resized, scaled_features


# ----------------------------------------------------------------------------
# Pure-JAX reference (same separable-bilinear math) for a sanity check.
# ----------------------------------------------------------------------------
def _reference(image, features, *, min_size, stride=16):
    C, H, W = image.shape
    (Ho, Wo), (ratio_w, ratio_h) = compute_output_size(H, W, min_size, stride)
    wh = bilinear_weight_matrix(H, Ho)
    ww = bilinear_weight_matrix(W, Wo).T
    resized = jnp.einsum("oh,chw,wx->cox", wh, image, ww)
    ratio = jnp.asarray([ratio_w, ratio_h], dtype=features.dtype)
    return resized, features / ratio


if __name__ == "__main__":
    key = jax.random.PRNGKey(0)
    k_img, k_feat = jax.random.split(key)

    # Small shapes consistent with the module: one CHW image plus (N, 2) keypoints.
    C, H, W = 3, 40, 56
    N = 8
    min_size, stride = 32, 16

    image = jax.random.uniform(k_img, (C, H, W), dtype=jnp.float32)
    features = jax.random.uniform(k_feat, (N, 2), dtype=jnp.float32) * jnp.asarray(
        [W, H], dtype=jnp.float32
    )

    resized, scaled = resize_validation_image_features(
        image, features, min_size=min_size, stride=stride
    )
    jax.block_until_ready((resized, scaled))

    ref_resized, ref_scaled = _reference(image, features, min_size=min_size, stride=stride)
    assert resized.shape == ref_resized.shape
    assert scaled.shape == ref_scaled.shape
    np.testing.assert_allclose(np.asarray(resized), np.asarray(ref_resized), rtol=1e-5, atol=1e-5)
    np.testing.assert_allclose(np.asarray(scaled), np.asarray(ref_scaled), rtol=1e-5, atol=1e-5)

    print("KERNEL_OK")
</pallas_src>

<mosaic_0001>
module attributes {stable_mosaic.version = 11 : i64} {
  func.func @kernel(%arg0: i32, %arg1: memref<120x56xf32, #tpu.memory_space<vmem>>, %arg2: memref<32x40xf32, #tpu.memory_space<vmem>>, %arg3: memref<56x32xf32, #tpu.memory_space<vmem>>, %arg4: memref<96x32xf32, #tpu.memory_space<vmem>>) attributes {dimension_semantics = [#tpu.dimension_semantics<parallel>], iteration_bounds = array<i64: 1>, scalar_prefetch = 0 : i64, scratch_operands = 0 : i64, tpu.core_type = #tpu.core_type<tc>, window_params = [{pipeline_mode = #tpu.pipeline_mode<synchronous>, transform_indices = @transform_0, window_bounds = array<i64: 120, 56>}, {pipeline_mode = #tpu.pipeline_mode<synchronous>, transform_indices = @transform_1, window_bounds = array<i64: 32, 40>}, {transform_indices = @transform_2, window_bounds = array<i64: 56, 32>}, {transform_indices = @transform_3, window_bounds = array<i64: 96, 32>}]} {
    %c0 = arith.constant 0 : index
    %c0_0 = arith.constant 0 : index
    %0 = vector.load %arg2[%c0, %c0_0] : memref<32x40xf32, #tpu.memory_space<vmem>>, vector<32x40xf32>
    %c0_1 = arith.constant 0 : index
    %c0_2 = arith.constant 0 : index
    %1 = vector.load %arg1[%c0_1, %c0_2] : memref<120x56xf32, #tpu.memory_space<vmem>>, vector<120x56xf32>
    %c0_3 = arith.constant 0 : index
    %c0_4 = arith.constant 0 : index
    %2 = vector.load %arg3[%c0_3, %c0_4] : memref<56x32xf32, #tpu.memory_space<vmem>>, vector<56x32xf32>
    %cst = arith.constant dense<0.000000e+00> : vector<120x32xf32>
    %3 = tpu.matmul %1, %2, %cst {dimension_numbers = #tpu.dot_dimension_numbers<[1], [0], [0], [1], [0, 0, 1, 1], [], []>} : vector<120x56xf32>, vector<56x32xf32>, vector<120x32xf32> -> vector<120x32xf32>
    %4 = vector.extract_strided_slice %3 {offsets = [0, 0], sizes = [40, 32], strides = [1, 1]} : vector<120x32xf32> to vector<40x32xf32>
    %cst_5 = arith.constant dense<0.000000e+00> : vector<32x32xf32>
    %5 = tpu.matmul %0, %4, %cst_5 {dimension_numbers = #tpu.dot_dimension_numbers<[1], [0], [0], [1], [0, 0, 1, 1], [], []>} : vector<32x40xf32>, vector<40x32xf32>, vector<32x32xf32> -> vector<32x32xf32>
    %c0_6 = arith.constant 0 : index
    %c0_7 = arith.constant 0 : index
    %6 = vector.load %arg4[%c0_6, %c0_7] : memref<96x32xf32, #tpu.memory_space<vmem>>, vector<32x32xf32>
    tpu.vector_store %arg4[%c0_6, %c0_7], %5 {strides = array<i32>} : memref<96x32xf32, #tpu.memory_space<vmem>>, vector<32x32xf32>,
    %7 = vector.extract_strided_slice %3 {offsets = [40, 0], sizes = [40, 32], strides = [1, 1]} : vector<120x32xf32> to vector<40x32xf32>
    %cst_8 = arith.constant dense<0.000000e+00> : vector<32x32xf32>
    %8 = tpu.matmul %0, %7, %cst_8 {dimension_numbers = #tpu.dot_dimension_numbers<[1], [0], [0], [1], [0, 0, 1, 1], [], []>} : vector<32x40xf32>, vector<40x32xf32>, vector<32x32xf32> -> vector<32x32xf32>
    %c32 = arith.constant 32 : index
    %c0_9 = arith.constant 0 : index
    %9 = vector.load %arg4[%c32, %c0_9] : memref<96x32xf32, #tpu.memory_space<vmem>>, vector<32x32xf32>
    tpu.vector_store %arg4[%c32, %c0_9], %8 {strides = array<i32>} : memref<96x32xf32, #tpu.memory_space<vmem>>, vector<32x32xf32>,
    %10 = vector.extract_strided_slice %3 {offsets = [80, 0], sizes = [40, 32], strides = [1, 1]} : vector<120x32xf32> to vector<40x32xf32>
    %cst_10 = arith.constant dense<0.000000e+00> : vector<32x32xf32>
    %11 = tpu.matmul %0, %10, %cst_10 {dimension_numbers = #tpu.dot_dimension_numbers<[1], [0], [0], [1], [0, 0, 1, 1], [], []>} : vector<32x40xf32>, vector<40x32xf32>, vector<32x32xf32> -> vector<32x32xf32>
    %c64 = arith.constant 64 : index
    %c0_11 = arith.constant 0 : index
    %12 = vector.load %arg4[%c64, %c0_11] : memref<96x32xf32, #tpu.memory_space<vmem>>, vector<32x32xf32>
    tpu.vector_store %arg4[%c64, %c0_11], %11 {strides = array<i32>} : memref<96x32xf32, #tpu.memory_space<vmem>>, vector<32x32xf32>,
    return
  }
  func.func @transform_0(%arg0: i32) -> (i32, i32) {
    %c0_i32 = arith.constant 0 : i32
    %c0_i32_0 = arith.constant 0 : i32
    %c0_i32_1 = arith.constant 0 : i32
    return %c0_i32, %c0_i32_0 : i32, i32
  }
  func.func @transform_1(%arg0: i32) -> (i32, i32) {
    %c0_i32 = arith.constant 0 : i32
    %c0_i32_0 = arith.constant 0 : i32
    %c0_i32_1 = arith.constant 0 : i32
    return %c0_i32, %c0_i32_0 : i32, i32
  }
  func.func @transform_2(%arg0: i32) -> (i32, i32) {
    %c0_i32 = arith.constant 0 : i32
    %c0_i32_0 = arith.constant 0 : i32
    return %c0_i32, %arg0 : i32, i32
  }
  func.func @transform_3(%arg0: i32) -> (i32, i32) {
    %c0_i32 = arith.constant 0 : i32
    %c0_i32_0 = arith.constant 0 : i32
    return %c0_i32, %arg0 : i32, i32
  }
}

</mosaic_0001>

<bundles_post_ra>
// kernel: tpu_custom_call.1
= control target key start
LH: loop header
LB: loop body
LE: loop exit
PB: predicated region body
PF: predicated region fallthrough
CT: control target
= control target key end

     0   :  { %v738_v0 = vmov 0.0|0.0   ;;  %vm739_vm0 = vmmov 0   ;;  %v740_v4 = vmov 0.0   ;;  %vm40_vm1 = vcmask 457728   ;;  %s951_s2 = inlined_call_operand.vmem [shape: f32[56,32], index: 2, kind: input, shape index: {}]   ;;  %s952_s0 = inlined_call_operand.vmem [shape: f32[120,56], index: 0, kind: input, shape index: {}]   ;;  %s953_s1 = inlined_call_operand.vmem [shape: f32[32,40], index: 1, kind: input, shape index: {}]   ;;  %s954_s3 = inlined_call_operand.vmem [shape: f32[96,32], index: 3, kind: output, shape index: {}]  }
   0x1   :  { %694 = vmatprep.subr.bf16.mxu0 %v738_v0  ;;  %v33_v1 = vld [vmem:[%s951_s2] sm:$0xff]  ;;  %v34_v2 = vld [vmem:[%s951_s2 + $0x8] sm:$0xff]  ;;  %v35_v3 = vld [vmem:[%s951_s2 + $0x10] sm:$0xff]  ;;  %601 = vmatprep.mubr.msk.f32.mxu0 %vm739_vm0, %v740_v4  ;;  %vm226_vm2 = vcmask 326656   ;;  %vm324_vm3 = vcmask 261120  }
   0x2   :  { %v695_v5 = vpack.c.bf16 %v34_v2, %v33_v1  ;;  %v36_v6 = vld [vmem:[%s951_s2 + $0x18] sm:$0xff]  ;;  %727 = vmatprep.subr.bf16.mxu1 %v738_v0  ;;  %634 = vmatprep.mubr.msk.f32.mxu1 %vm739_vm0, %v740_v4  ;;  %v37_v8 = vld [vmem:[%s951_s2 + $0x20] sm:$0xff]  ;;  %v38_v9 = vld [vmem:[%s951_s2 + $0x28] sm:$0xff] }
   0x3   :  { %v698_v7 = vpack.c.bf16 %v36_v6, %v35_v3  ;;  %v701_v10 = vpack.c.bf16 %v38_v9, %v37_v8  ;;  %v39_v11 = vld [vmem:[%s951_s2 + $0x30] sm:$0xff]  ;;  %v18_v12 = vld [vmem:[%s952_s0] sm:$0xff]  ;;  %v29_v13 = vld [vmem:[%s952_s0 + $0x58] sm:$0xff] }
   0x4   :  { %696 = vmatpush3.bf16.msra.mxu0 %v695_v5  ;;  %731 = vmatpush3.bf16.msra.mxu1 %v695_v5  ;;  %v19_v14 = vld [vmem:[%s952_s0 + $0x8] sm:$0xff]  ;;  %v30_v15 = vld [vmem:[%s952_s0 + $0x60] sm:$0xff]  ;;  %v20_v16 = vld [vmem:[%s952_s0 + $0x10] sm:$0xff] }
   0x5   :  { %697 = vmatprep.subr.bf16.mxu0 %v738_v0  ;;  %728 = vmatprep.subr.bf16.mxu1 %v738_v0  ;;  %v31_v17 = vld [vmem:[%s952_s0 + $0x68] sm:$0xff]  ;;  %v21_v18 = vld [vmem:[%s952_s0 + $0x18] sm:$0xff]  ;;  %v32_v19 = vld [vmem:[%s952_s0 + $0x70] sm:$0xff] }
   0x6   :  { %v22_v20 = vld [vmem:[%s952_s0 + $0x20] sm:$0xff]  ;;  %v23_v21 = vld [vmem:[%s952_s0 + $0x28] sm:$0xff]  ;;  %v24_v22 = vld [vmem:[%s952_s0 + $0x30] sm:$0xff] }
   0x7   :  { %v25_v23 = vld [vmem:[%s952_s0 + $0x38] sm:$0xff]  ;;  %v26_v24 = vld [vmem:[%s952_s0 + $0x40] sm:$0xff]  ;;  %v27_v25 = vld [vmem:[%s952_s0 + $0x48] sm:$0xff] }
   0x8   :  { %699 = vmatpush3.bf16.msra.mxu0 %v698_v7  ;;  %732 = vmatpush3.bf16.msra.mxu1 %v698_v7  ;;  %v28_v26 = vld [vmem:[%s952_s0 + $0x50] sm:$0xff]  ;;  %v877_v27 = vld [vmem:[%s953_s1] sm:$0xff]  ;;  %v15_v49 = vld [vmem:[%s953_s1 + $0x8] sm:$0xff] }
   0x9   :  { %700 = vmatprep.subr.bf16.mxu0 %v738_v0  ;;  %729 = vmatprep.subr.bf16.mxu1 %v738_v0  ;;  %v16_v50 = vld [vmem:[%s953_s1 + $0x10] sm:$0xff]  ;;  %v17_v53 = vld [vmem:[%s953_s1 + $0x18] sm:$0xff] }
   0xc   :  { %702 = vmatpush3.bf16.msra.mxu0 %v701_v10  ;;  %733 = vmatpush3.bf16.msra.mxu1 %v701_v10 }
   0xd   :  { %599 = vmatprep.subr.mxu0 %v740_v4  ;;  %730 = vmatprep.subr.mxu1 %v740_v4 }
  0x10   :  { %600 = vmatpush3.msra.mxu0 %v39_v11  ;;  %734 = vmatpush3.msra.mxu1 %v39_v11 }
  0x11   :  { %602 = vmatmul.mubr.msk.f32.vlgmr.msra.gmra.mrb[0].mxu0 %vm40_vm1, %v18_v12  ;;  %635 = vmatmul.mubr.msk.f32.vlgmr.msra.gmra.mrb[0].mxu1 %vm40_vm1, %v29_v13 }
  0x12   :  { %604 = vmatprep.mubr.msk.f32.mxu0 %vm739_vm0, %v740_v4  ;;  %637 = vmatprep.mubr.msk.f32.mxu1 %vm739_vm0, %v740_v4 }
  0x15   :  { %605 = vmatmul.mubr.msk.f32.gmra.mrb[2].mxu0 %vm40_vm1, %v19_v14  ;;  %638 = vmatmul.mubr.msk.f32.gmra.mrb[2].mxu1 %vm40_vm1, %v30_v15 }
  0x16   :  { %607 = vmatprep.mubr.msk.f32.mxu0 %vm739_vm0, %v740_v4  ;;  %640 = vmatprep.mubr.msk.f32.mxu1 %vm739_vm0, %v740_v4 }
  0x19   :  { %608 = vmatmul.mubr.msk.f32.gmra.mrb[4].mxu0 %vm40_vm1, %v20_v16  ;;  %641 = vmatmul.mubr.msk.f32.gmra.mrb[4].mxu1 %vm40_vm1, %v31_v17 }
  0x1a   :  { %610 = vmatprep.mubr.msk.f32.mxu0 %vm739_vm0, %v740_v4  ;;  %643 = vmatprep.mubr.msk.f32.mxu1 %vm739_vm0, %v740_v4 }
  0x1d   :  { %611 = vmatmul.mubr.msk.f32.gmra.mrb[6].mxu0 %vm40_vm1, %v21_v18  ;;  %644 = vmatmul.mubr.msk.f32.gmra.mrb[6].mxu1 %vm40_vm1, %v32_v19 }
  0x1e   :  { %613 = vmatprep.mubr.msk.f32.mxu0 %vm739_vm0, %v740_v4  ;;  %656 = vmatprep.mubr.msk.f32.mxu1 %vm226_vm2, %v877_v27 }
  0x21   :  { %614 = vmatmul.mubr.msk.f32.gmra.mrb[8].mxu0 %vm40_vm1, %v22_v20 }
  0x22   :  { %616 = vmatprep.mubr.msk.f32.mxu0 %vm739_vm0, %v740_v4 }
  0x25   :  { %617 = vmatmul.mubr.msk.f32.gmra.mrb[10].mxu0 %vm40_vm1, %v23_v21 }
  0x26   :  { %619 = vmatprep.mubr.msk.f32.mxu0 %vm739_vm0, %v740_v4 }
  0x29   :  { %620 = vmatmul.mubr.msk.f32.gmra.mrb[12].mxu0 %vm40_vm1, %v24_v22 }
  0x2a   :  { %622 = vmatprep.mubr.msk.f32.mxu0 %vm739_vm0, %v740_v4 }
  0x2d   :  { %623 = vmatmul.mubr.msk.f32.gmra.mrb[14].mxu0 %vm40_vm1, %v25_v23 }
  0x2e   :  { %625 = vmatprep.mubr.msk.f32.mxu0 %vm739_vm0, %v740_v4 }
  0x31   :  { %626 = vmatmul.mubr.msk.f32.gmra.mrb[16].mxu0 %vm40_vm1, %v26_v24 }
  0x32   :  { %628 = vmatprep.mubr.msk.f32.mxu0 %vm739_vm0, %v740_v4 }
  0x35   :  { %629 = vmatmul.mubr.msk.f32.gmra.mrb[18].mxu0 %vm40_vm1, %v27_v25 }
  0x36   :  { %631 = vmatprep.mubr.msk.f32.mxu0 %vm739_vm0, %v740_v4 }
  0x39   :  { %632 = vmatmul.mubr.msk.f32.gmra.mrb[20].mxu0 %vm40_vm1, %v28_v26 }
  0xe4   :  { %v152_v28 = vpop.f32.mrb[0].mxu0  ;;  %v207_v29 = vpop.f32.mrb[0].mxu1 }
  0xe5   :  { %v603_v30 = vpop.f32.mrb[1].mxu0  ;;  %v636_v31 = vpop.f32.mrb[1].mxu1 }
  0xe8   :  { %v157_v32 = vpop.f32.mrb[2].mxu0  ;;  %v212_v33 = vpop.f32.mrb[2].mxu1 }
  0xe9   :  { %v703_v34 = vpack.c.bf16 %v157_v32, %v152_v28  ;;  %v606_v35 = vpop.f32.mrb[3].mxu0  ;;  %v639_v36 = vpop.f32.mrb[3].mxu1 }
  0xeb   :  { %704 = vmatprep.subr.bf16.mxu1 %v703_v34 }
  0xec   :  { %v162_v37 = vpop.f32.mrb[4].mxu0  ;;  %706 = vmatpush3.bf16.msra.mxu1 %v703_v34  ;;  %v217_v38 = vpop.f32.mrb[4].mxu1 }
  0xed   :  { %v609_v39 = vpop.f32.mrb[5].mxu0  ;;  %v723_v40 = vpack.c.bf16 %v217_v38, %v212_v33  ;;  %v642_v41 = vpop.f32.mrb[5].mxu1 }
  0xf0   :  { %v167_v42 = vpop.f32.mrb[6].mxu0  ;;  %v222_v43 = vpop.f32.mrb[6].mxu1 }
  0xf1   :  { %v707_v44 = vpack.c.bf16 %v167_v42, %v162_v37  ;;  %v612_v45 = vpop.f32.mrb[7].mxu0  ;;  %v645_v46 = vpop.f32.mrb[7].mxu1 }
  0xf3   :  { %708 = vmatprep.subr.bf16.mxu1 %v707_v44 }
  0xf4   :  { %v172_v47 = vpop.f32.mrb[8].mxu0  ;;  %710 = vmatpush3.bf16.msra.mxu1 %v707_v44 }
  0xf5   :  { %v615_v48 = vpop.f32.mrb[9].mxu0  ;;  %654 = vmatprep.subr.mxu1 %v172_v47 }
  0xf8   :  { %v177_v51 = vpop.f32.mrb[10].mxu0  ;;  %655 = vmatpush3.msra.mxu1 %v172_v47 }
  0xf9   :  { %v618_v52 = vpop.f32.mrb[11].mxu0  ;;  %657 = vmatmul.mubr.msk.f32.vlgmr.msra.gmra.mrb[8].mxu1 %vm226_vm2, %v15_v49 }
  0xfa   :  { %659 = vmatprep.mubr.msk.f32.mxu1 %vm226_vm2, %v16_v50 }
  0xfc   :  { %v182_v54 = vpop.f32.mrb[12].mxu0 }
  0xfd   :  { %v711_v55 = vpack.c.bf16 %v182_v54, %v177_v51  ;;  %v621_v56 = vpop.f32.mrb[13].mxu0  ;;  %660 = vmatmul.mubr.msk.f32.gmra.mrb[10].mxu1 %vm226_vm2, %v17_v53 }
  0xfe   :  { %672 = vmatprep.mubr.msk.f32.mxu1 %vm226_vm2, %v877_v27 }
  0xff   :  { %712 = vmatprep.subr.bf16.mxu1 %v711_v55 }
 0x100   :  { %v187_v57 = vpop.f32.mrb[14].mxu0  ;;  %714 = vmatpush3.bf16.msra.mxu1 %v711_v55 }
 0x101   :  { %v624_v58 = vpop.f32.mrb[15].mxu0 }
 0x104   :  { %v192_v59 = vpop.f32.mrb[16].mxu0 }
 0x105   :  { %v715_v60 = vpack.c.bf16 %v192_v59, %v187_v57  ;;  %v627_v61 = vpop.f32.mrb[17].mxu0 }
 0x107   :  { %716 = vmatprep.subr.bf16.mxu1 %v715_v60 }
 0x108   :  { %v197_v62 = vpop.f32.mrb[18].mxu0  ;;  %718 = vmatpush3.bf16.msra.mxu1 %v715_v60 }
 0x109   :  { %v630_v63 = vpop.f32.mrb[19].mxu0  ;;  %670 = vmatprep.subr.mxu1 %v197_v62 }
 0x10c   :  { %v202_v0 = vpop.f32.mrb[20].mxu0  ;;  %671 = vmatpush3.msra.mxu1 %v197_v62 }
 0x10d   :  { %v719_v1 = vpack.c.bf16 %v207_v29, %v202_v0  ;;  %v633_v2 = vpop.f32.mrb[21].mxu0  ;;  %673 = vmatmul.mubr.msk.f32.vlgmr.msra.gmra.mrb[12].mxu1 %vm226_vm2, %v15_v49 }
 0x10e   :  { %675 = vmatprep.mubr.msk.f32.mxu1 %vm226_vm2, %v16_v50 }
 0x10f   :  { %720 = vmatprep.subr.bf16.mxu1 %v719_v1 }
 0x110   :  { %722 = vmatpush3.bf16.msra.mxu1 %v719_v1 }
 0x111   :  { %724 = vmatprep.subr.bf16.mxu1 %v723_v40  ;;  %676 = vmatmul.mubr.msk.f32.gmra.mrb[14].mxu1 %vm226_vm2, %v17_v53 }
 0x112   :  { %688 = vmatprep.mubr.msk.f32.mxu1 %vm226_vm2, %v877_v27 }
 0x114   :  { %726 = vmatpush3.bf16.msra.mxu1 %v723_v40 }
 0x115   :  { %686 = vmatprep.subr.mxu1 %v222_v43 }
 0x118   :  { %687 = vmatpush3.msra.mxu1 %v222_v43 }
 0x119   :  { %689 = vmatmul.mubr.msk.f32.vlgmr.msra.gmra.mrb[16].mxu1 %vm226_vm2, %v15_v49 }
 0x11a   :  { %691 = vmatprep.mubr.msk.f32.mxu1 %vm226_vm2, %v16_v50 }
 0x11d   :  { %692 = vmatmul.mubr.msk.f32.gmra.mrb[18].mxu1 %vm226_vm2, %v17_v53 }
 0x1cc   :  { %v658_v3 = vpop.f32.mrb[8].mxu1 }
 0x1cd   :  { %326 = vst.msk [vmem:[%s954_s3 + $0x8] sm:$0xff] %vm324_vm3, %v658_v3  ;;  %v305_v4 = vpop.f32.mrb[9].mxu1 }
 0x1ce   :  { %325 = vst.msk [vmem:[%s954_s3] sm:$0xff] %vm324_vm3, %v305_v4 }
 0x1d0   :  { %v661_v5 = vpop.f32.mrb[10].mxu1 }
 0x1d1   :  { %328 = vst.msk [vmem:[%s954_s3 + $0x18] sm:$0xff] %vm324_vm3, %v661_v5  ;;  %v315_v6 = vpop.f32.mrb[11].mxu1 }
 0x1d2   :  { %327 = vst.msk [vmem:[%s954_s3 + $0x10] sm:$0xff] %vm324_vm3, %v315_v6 }
 0x1e0   :  { %v674_v7 = vpop.f32.mrb[12].mxu1 }
 0x1e1   :  { %415 = vst.msk [vmem:[%s954_s3 + $0x28] sm:$0xff] %vm324_vm3, %v674_v7  ;;  %v395_v8 = vpop.f32.mrb[13].mxu1 }
 0x1e2   :  { %414 = vst.msk [vmem:[%s954_s3 + $0x20] sm:$0xff] %vm324_vm3, %v395_v8 }
 0x1e4   :  { %v677_v9 = vpop.f32.mrb[14].mxu1 }
 0x1e5   :  { %417 = vst.msk [vmem:[%s954_s3 + $0x38] sm:$0xff] %vm324_vm3, %v677_v9  ;;  %v405_v10 = vpop.f32.mrb[15].mxu1 }
 0x1e6   :  { %416 = vst.msk [vmem:[%s954_s3 + $0x30] sm:$0xff] %vm324_vm3, %v405_v10 }
 0x1ec   :  { %v690_v11 = vpop.f32.mrb[16].mxu1 }
 0x1ed   :  { %504 = vst.msk [vmem:[%s954_s3 + $0x48] sm:$0xff] %vm324_vm3, %v690_v11  ;;  %v484_v12 = vpop.f32.mrb[17].mxu1 }
 0x1ee   :  { %503 = vst.msk [vmem:[%s954_s3 + $0x40] sm:$0xff] %vm324_vm3, %v484_v12 }
 0x1f0   :  { %v693_v13 = vpop.f32.mrb[18].mxu1 }
 0x1f1   :  { %506 = vst.msk [vmem:[%s954_s3 + $0x58] sm:$0xff] %vm324_vm3, %v693_v13  ;;  %v494_v14 = vpop.f32.mrb[19].mxu1 }
 0x1f2   :  { %505 = vst.msk [vmem:[%s954_s3 + $0x50] sm:$0xff] %vm324_vm3, %v494_v14 }

</bundles_post_ra>
